<compile_context>
chip_gen: v7x
topology: tpu7x:2x2x1
jax: 0.10.0
libtpu: 0.0.40
codegen_flags: <defaults>
</compile_context>

<pallas_src>
import functools

import jax
import jax.numpy as jnp
from jax import lax
from jax.experimental import pallas as pl
from jax.experimental.pallas import tpu as pltpu

LN_EPS = 1e-5  # torch.nn.LayerNorm default


def _round_up(x, m):
    return ((x + m - 1) // m) * m


def _pick_vmem_limit_bytes():
    # ~3/4 of per-core VMEM, capped at 100 MiB: 96 MiB on v5e/v6e (128 MiB
    # physical), 48 MiB on v7x (64 MiB per TC).  Falls back to a v7x-safe value.
    try:
        cap = int(pltpu.get_tpu_info().vmem_capacity_bytes)
    except Exception:
        cap = 64 * 1024 * 1024
    return min((cap * 3) // 4, 100 * 1024 * 1024)


def _pick_h_chunk(hidden):
    # Cap the live (tm, h_chunk) f32 hidden activation; chunks stay multiples
    # of 256 so the GEMM2 contraction depth fills v6e/v7x's 256-deep MXU.
    if hidden <= 1024:
        return hidden
    for c in (1024, 768, 512, 256):
        if hidden % c == 0:
            return c
    return hidden


def _ffn_kernel(x_ref, gamma_ref, beta_ref, w1_ref, b1_ref, w2_ref, b2_ref,
                o_ref, *, h_chunk):
    # x tile: (tm, D).  LayerNorm stats / bias adds / SiLU run in f32 on the
    # VPU/EUP (v5e has no bf16 VALU); both GEMMs take bf16 MXU operands with
    # f32 accumulation via preferred_element_type.
    x = x_ref[...].astype(jnp.float32)
    d = x.shape[-1]
    hidden = w1_ref.shape[-1]

    # ---- LayerNorm: one-pass moments (reductions go to the XLU slot) -------
    inv_d = jnp.float32(1.0 / d)
    mean = jnp.sum(x, axis=-1, keepdims=True) * inv_d
    mean_sq = jnp.sum(x * x, axis=-1, keepdims=True) * inv_d
    var = jnp.maximum(mean_sq - mean * mean, 0.0)
    xn = (x - mean) * lax.rsqrt(var + LN_EPS)
    xn = xn * gamma_ref[...] + beta_ref[...]
    xn_bf = xn.astype(jnp.bfloat16)

    # ---- Linear(D->H) + bias -> SiLU -> Linear(H->D), chunked over H -------
    n_chunks = hidden // h_chunk  # h_chunk divides hidden by construction
    y = jnp.zeros((x.shape[0], w2_ref.shape[-1]), jnp.float32)
    for c in range(n_chunks):
        sl = pl.ds(c * h_chunk, h_chunk)
        h = jnp.dot(xn_bf, w1_ref[:, sl], preferred_element_type=jnp.float32)
        h = h + b1_ref[:, sl]
        h = h * jax.nn.sigmoid(h)  # SiLU (sigmoid exp goes to the EUP)
        # TODO(synk): Dropout(p=0.0) is identity (eval / p=0); a training path
        # would need pltpu.prng_seed / prng_random_bits masking.
        y = y + jnp.dot(h.astype(jnp.bfloat16), w2_ref[sl, :],
                        preferred_element_type=jnp.float32)
    y = y + b2_ref[...]
    o_ref[...] = y.astype(o_ref.dtype)


def feed_forward_module(x, gamma, beta, w1, b1, w2, b2, *, tm=512):
    """x: (B, T, D). Returns (B, T, D) in x.dtype."""
    B, T, D = x.shape
    H = w1.shape[1]
    M = B * T

    # Big row tile for DMA efficiency, but capped so there are >=2 grid steps
    # whenever possible (v7x shards the "parallel" axis across its 2 TCs).
    tm = max(8, min(tm, _round_up(pl.cdiv(M, 2), 8)))
    grid_m = pl.cdiv(M, tm)
    h_chunk = _pick_h_chunk(H)

    # No padding / slicing round trips: block shapes use the full D / H
    # extents; weights are cast once to bf16 MXU operands.
    x2 = x.reshape(M, D)
    gamma2 = gamma.astype(jnp.float32).reshape(1, D)
    beta2 = beta.astype(jnp.float32).reshape(1, D)
    w1b = w1.astype(jnp.bfloat16)
    b1f = b1.astype(jnp.float32).reshape(1, H)
    w2b = w2.astype(jnp.bfloat16)
    b2f = b2.astype(jnp.float32).reshape(1, D)

    kernel = functools.partial(_ffn_kernel, h_chunk=h_chunk)
    const = lambda i: (0, 0)  # resident parameter blocks (same block each step)

    cost = pl.CostEstimate(
        flops=int(4 * M * D * H + 8 * M * D),
        transcendentals=int(M * H),
        bytes_accessed=int(2 * M * D * x.dtype.itemsize   # x in, y out
                           + 4 * D * H                     # two bf16 weights
                           + 4 * (3 * D + H)),             # gamma/beta/biases
    )

    out2 = pl.pallas_call(
        kernel,
        out_shape=jax.ShapeDtypeStruct((M, D), x.dtype),
        grid_spec=pltpu.PrefetchScalarGridSpec(
            num_scalar_prefetch=0,
            grid=(grid_m,),
            in_specs=[
                pl.BlockSpec((tm, D), lambda i: (i, 0)),  # x row tile
                pl.BlockSpec((1, D), const),              # LayerNorm gamma
                pl.BlockSpec((1, D), const),              # LayerNorm beta
                pl.BlockSpec((D, H), const),              # W1 (bf16)
                pl.BlockSpec((1, H), const),              # b1
                pl.BlockSpec((H, D), const),              # W2 (bf16)
                pl.BlockSpec((1, D), const),              # b2
            ],
            out_specs=pl.BlockSpec((tm, D), lambda i: (i, 0)),
        ),
        compiler_params=pltpu.CompilerParams(
            dimension_semantics=("parallel",),
            vmem_limit_bytes=_pick_vmem_limit_bytes(),
        ),
        cost_estimate=cost,
    )(x2, gamma2, beta2, w1b, b1f, w2b, b2f)

    return out2.reshape(B, T, D)


def _reference(x, gamma, beta, w1, b1, w2, b2):
    mean = jnp.mean(x, axis=-1, keepdims=True)
    var = jnp.mean((x - mean) ** 2, axis=-1, keepdims=True)
    xn = (x - mean) / jnp.sqrt(var + LN_EPS) * gamma + beta
    h = xn @ w1 + b1
    h = h * jax.nn.sigmoid(h)
    return h @ w2 + b2


if __name__ == "__main__":
    B, T = 2, 8          # batch, sequence length
    D, H = 32, 64        # input_dim, hidden_dim

    key = jax.random.PRNGKey(0)
    kx, kg, kb, kw1, kb1, kw2, kb2 = jax.random.split(key, 7)

    x = jax.random.normal(kx, (B, T, D), dtype=jnp.float32)

    # Deterministic synthetic parameters (shapes from the module __init__)
    gamma = 1.0 + 0.1 * jax.random.normal(kg, (D,), dtype=jnp.float32)
    beta = 0.1 * jax.random.normal(kb, (D,), dtype=jnp.float32)
    w1 = jax.random.normal(kw1, (D, H), dtype=jnp.float32) / jnp.sqrt(D)
    b1 = 0.1 * jax.random.normal(kb1, (H,), dtype=jnp.float32)
    w2 = jax.random.normal(kw2, (H, D), dtype=jnp.float32) / jnp.sqrt(H)
    b2 = 0.1 * jax.random.normal(kb2, (D,), dtype=jnp.float32)

    out = feed_forward_module(x, gamma, beta, w1, b1, w2, b2)
    out = jax.block_until_ready(out)

    ref = _reference(x, gamma, beta, w1, b1, w2, b2)
    assert out.shape == (B, T, D)
    # bf16 MXU operands -> looser tolerance than the f32 reference
    # (intentional inference-precision tradeoff).
    assert jnp.allclose(out, ref, atol=2e-2, rtol=2e-2), "mismatch vs reference"

    print("KERNEL_OK")
</pallas_src>

<mosaic_0001>
module attributes {stable_mosaic.version = 11 : i64} {
  func.func @_ffn_kernel(%arg0: i32, %arg1: memref<8x32xf32, #tpu.memory_space<vmem>>, %arg2: memref<1x32xf32, #tpu.memory_space<vmem>>, %arg3: memref<1x32xf32, #tpu.memory_space<vmem>>, %arg4: memref<32x64xbf16, #tpu.memory_space<vmem>>, %arg5: memref<1x64xf32, #tpu.memory_space<vmem>>, %arg6: memref<64x32xbf16, #tpu.memory_space<vmem>>, %arg7: memref<1x32xf32, #tpu.memory_space<vmem>>, %arg8: memref<8x32xf32, #tpu.memory_space<vmem>>) attributes {dimension_semantics = [#tpu.dimension_semantics<parallel>], iteration_bounds = array<i64: 2>, scalar_prefetch = 0 : i64, scratch_operands = 0 : i64, tpu.core_type = #tpu.core_type<tc>, window_params = [{transform_indices = @transform_0, window_bounds = array<i64: 8, 32>}, {pipeline_mode = #tpu.pipeline_mode<synchronous>, transform_indices = @transform_1, window_bounds = array<i64: 1, 32>}, {pipeline_mode = #tpu.pipeline_mode<synchronous>, transform_indices = @transform_2, window_bounds = array<i64: 1, 32>}, {pipeline_mode = #tpu.pipeline_mode<synchronous>, transform_indices = @transform_3, window_bounds = array<i64: 32, 64>}, {pipeline_mode = #tpu.pipeline_mode<synchronous>, transform_indices = @transform_4, window_bounds = array<i64: 1, 64>}, {pipeline_mode = #tpu.pipeline_mode<synchronous>, transform_indices = @transform_5, window_bounds = array<i64: 64, 32>}, {pipeline_mode = #tpu.pipeline_mode<synchronous>, transform_indices = @transform_6, window_bounds = array<i64: 1, 32>}, {transform_indices = @transform_7, window_bounds = array<i64: 8, 32>}]} {
    %c0 = arith.constant 0 : index
    %c0_0 = arith.constant 0 : index
    %0 = vector.load %arg1[%c0, %c0_0] : memref<8x32xf32, #tpu.memory_space<vmem>>, vector<8x32xf32>
    %cst = arith.constant dense<0.000000e+00> : vector<8xf32>
    %1 = vector.multi_reduction <add>, %0, %cst [1] : vector<8x32xf32> to vector<8xf32>
    %2 = vector.shape_cast %1 : vector<8xf32> to vector<8x1xf32>
    %cst_1 = arith.constant 3.125000e-02 : f32
    %3 = vector.broadcast %cst_1 : f32 to vector<8x1xf32>
    %4 = arith.mulf %2, %3 : vector<8x1xf32>
    %5 = arith.mulf %0, %0 : vector<8x32xf32>
    %cst_2 = arith.constant dense<0.000000e+00> : vector<8xf32>
    %6 = vector.multi_reduction <add>, %5, %cst_2 [1] : vector<8x32xf32> to vector<8xf32>
    %7 = vector.shape_cast %6 : vector<8xf32> to vector<8x1xf32>
    %cst_3 = arith.constant 3.125000e-02 : f32
    %8 = vector.broadcast %cst_3 : f32 to vector<8x1xf32>
    %9 = arith.mulf %7, %8 : vector<8x1xf32>
    %10 = arith.mulf %4, %4 : vector<8x1xf32>
    %11 = arith.subf %9, %10 : vector<8x1xf32>
    %cst_4 = arith.constant 0.000000e+00 : f32
    %12 = vector.broadcast %cst_4 : f32 to vector<8x1xf32>
    %13 = arith.maximumf %11, %12 : vector<8x1xf32>
    %14 = vector.broadcast %4 : vector<8x1xf32> to vector<8x32xf32>
    %15 = arith.subf %0, %14 : vector<8x32xf32>
    %cst_5 = arith.constant 9.99999974E-6 : f32
    %16 = vector.broadcast %cst_5 : f32 to vector<8x1xf32>
    %17 = arith.addf %13, %16 : vector<8x1xf32>
    %18 = math.rsqrt %17 : vector<8x1xf32>
    %19 = vector.broadcast %18 : vector<8x1xf32> to vector<8x32xf32>
    %20 = arith.mulf %15, %19 : vector<8x32xf32>
    %c0_6 = arith.constant 0 : index
    %c0_7 = arith.constant 0 : index
    %21 = vector.load %arg2[%c0_6, %c0_7] : memref<1x32xf32, #tpu.memory_space<vmem>>, vector<1x32xf32>
    %22 = vector.broadcast %21 : vector<1x32xf32> to vector<8x32xf32>
    %23 = arith.mulf %20, %22 : vector<8x32xf32>
    %c0_8 = arith.constant 0 : index
    %c0_9 = arith.constant 0 : index
    %24 = vector.load %arg3[%c0_8, %c0_9] : memref<1x32xf32, #tpu.memory_space<vmem>>, vector<1x32xf32>
    %25 = vector.broadcast %24 : vector<1x32xf32> to vector<8x32xf32>
    %26 = arith.addf %23, %25 : vector<8x32xf32>
    %27 = arith.truncf %26 : vector<8x32xf32> to vector<8x32xbf16>
    %cst_10 = arith.constant 0.000000e+00 : f32
    %28 = vector.broadcast %cst_10 : f32 to vector<8x32xf32>
    %c0_11 = arith.constant 0 : index
    %c0_12 = arith.constant 0 : index
    %29 = vector.load %arg4[%c0_11, %c0_12] : memref<32x64xbf16, #tpu.memory_space<vmem>>, vector<32x64xbf16>
    %cst_13 = arith.constant dense<0.000000e+00> : vector<8x64xf32>
    %30 = tpu.matmul %27, %29, %cst_13 {dimension_numbers = #tpu.dot_dimension_numbers<[1], [0], [0], [1], [0, 0, 1, 1], [], []>} : vector<8x32xbf16>, vector<32x64xbf16>, vector<8x64xf32> -> vector<8x64xf32>
    %c0_14 = arith.constant 0 : index
    %c0_15 = arith.constant 0 : index
    %31 = vector.load %arg5[%c0_14, %c0_15] : memref<1x64xf32, #tpu.memory_space<vmem>>, vector<1x64xf32>
    %32 = vector.broadcast %31 : vector<1x64xf32> to vector<8x64xf32>
    %33 = arith.addf %30, %32 : vector<8x64xf32>
    %34 = arith.negf %33 : vector<8x64xf32>
    %35 = math.exp %34 : vector<8x64xf32>
    %cst_16 = arith.constant 1.000000e+00 : f32
    %36 = vector.broadcast %cst_16 : f32 to vector<8x64xf32>
    %37 = arith.addf %36, %35 : vector<8x64xf32>
    %38 = arith.divf %36, %37 : vector<8x64xf32>
    %39 = arith.mulf %33, %38 : vector<8x64xf32>
    %40 = arith.truncf %39 : vector<8x64xf32> to vector<8x64xbf16>
    %c0_17 = arith.constant 0 : index
    %c0_18 = arith.constant 0 : index
    %41 = vector.load %arg6[%c0_17, %c0_18] : memref<64x32xbf16, #tpu.memory_space<vmem>>, vector<64x32xbf16>
    %cst_19 = arith.constant dense<0.000000e+00> : vector<8x32xf32>
    %42 = tpu.matmul %40, %41, %cst_19 {dimension_numbers = #tpu.dot_dimension_numbers<[1], [0], [0], [1], [0, 0, 1, 1], [], []>} : vector<8x64xbf16>, vector<64x32xbf16>, vector<8x32xf32> -> vector<8x32xf32>
    %43 = arith.addf %28, %42 : vector<8x32xf32>
    %c0_20 = arith.constant 0 : index
    %c0_21 = arith.constant 0 : index
    %44 = vector.load %arg7[%c0_20, %c0_21] : memref<1x32xf32, #tpu.memory_space<vmem>>, vector<1x32xf32>
    %45 = vector.broadcast %44 : vector<1x32xf32> to vector<8x32xf32>
    %46 = arith.addf %43, %45 : vector<8x32xf32>
    %c0_22 = arith.constant 0 : index
    %c0_23 = arith.constant 0 : index
    %47 = vector.load %arg8[%c0_22, %c0_23] : memref<8x32xf32, #tpu.memory_space<vmem>>, vector<8x32xf32>
    tpu.vector_store %arg8[%c0_22, %c0_23], %46 {strides = array<i32>} : memref<8x32xf32, #tpu.memory_space<vmem>>, vector<8x32xf32>,
    return
  }
  func.func @transform_0(%arg0: i32) -> (i32, i32) {
    %c0_i32 = arith.constant 0 : i32
    %c0_i32_0 = arith.constant 0 : i32
    return %arg0, %c0_i32 : i32, i32
  }
  func.func @transform_1(%arg0: i32) -> (i32, i32) {
    %c0_i32 = arith.constant 0 : i32
    %c0_i32_0 = arith.constant 0 : i32
    %c0_i32_1 = arith.constant 0 : i32
    return %c0_i32, %c0_i32_0 : i32, i32
  }
  func.func @transform_2(%arg0: i32) -> (i32, i32) {
    %c0_i32 = arith.constant 0 : i32
    %c0_i32_0 = arith.constant 0 : i32
    %c0_i32_1 = arith.constant 0 : i32
    return %c0_i32, %c0_i32_0 : i32, i32
  }
  func.func @transform_3(%arg0: i32) -> (i32, i32) {
    %c0_i32 = arith.constant 0 : i32
    %c0_i32_0 = arith.constant 0 : i32
    %c0_i32_1 = arith.constant 0 : i32
    return %c0_i32, %c0_i32_0 : i32, i32
  }
  func.func @transform_4(%arg0: i32) -> (i32, i32) {
    %c0_i32 = arith.constant 0 : i32
    %c0_i32_0 = arith.constant 0 : i32
    %c0_i32_1 = arith.constant 0 : i32
    return %c0_i32, %c0_i32_0 : i32, i32
  }
  func.func @transform_5(%arg0: i32) -> (i32, i32) {
    %c0_i32 = arith.constant 0 : i32
    %c0_i32_0 = arith.constant 0 : i32
    %c0_i32_1 = arith.constant 0 : i32
    return %c0_i32, %c0_i32_0 : i32, i32
  }
  func.func @transform_6(%arg0: i32) -> (i32, i32) {
    %c0_i32 = arith.constant 0 : i32
    %c0_i32_0 = arith.constant 0 : i32
    %c0_i32_1 = arith.constant 0 : i32
    return %c0_i32, %c0_i32_0 : i32, i32
  }
  func.func @transform_7(%arg0: i32) -> (i32, i32) {
    %c0_i32 = arith.constant 0 : i32
    %c0_i32_0 = arith.constant 0 : i32
    return %arg0, %c0_i32 : i32, i32
  }
}

</mosaic_0001>

<bundles_post_ra>
// kernel: tpu_custom_call.1
= control target key start
LH: loop header
LB: loop body
LE: loop exit
PB: predicated region body
PF: predicated region fallthrough
CT: control target
= control target key end

     0   :  { %12 = vsyncpa [#allocation3], 0  ;;  %s886_s0 = inlined_call_operand.vmem [shape: f32[16,32], index: 0, kind: input, shape index: {}]   ;;  %s887_s1 = inlined_call_operand.vmem [shape: f32[1,32], index: 1, kind: input, shape index: {}]   ;;  %s888_s2 = inlined_call_operand.vmem [shape: f32[1,32], index: 2, kind: input, shape index: {}]   ;;  %s889_s3 = inlined_call_operand.vmem [shape: bf16[32,64], index: 3, kind: input, shape index: {}]   ;;  %s890_s4 = inlined_call_operand.vmem [shape: f32[1,64], index: 4, kind: input, shape index: {}]   ;;  %s891_s5 = inlined_call_operand.vmem [shape: bf16[64,32], index: 5, kind: input, shape index: {}]   ;;  %s892_s6 = inlined_call_operand.vmem [shape: f32[1,32], index: 6, kind: input, shape index: {}]   ;;  %s893_s7 = inlined_call_operand.hbm [shape: f32[16,32], index: 7, kind: output, shape index: {}]  }
   0x1   :  { %14 = vsyncpa [#allocation3 + $0x1], 0  ;;  %s752_s24 = smov 0   ;;  %s754_s25 = smov 0  }
   0x2   :  { %s756_s26 = smov 0   ;;  %s758_s27 = smov 0  }
   0x3 LB: > { %s773_s28 = sadd.s32 4294967295, %s707_s27   ;;  %s541_s29 = sadd.s32 4294967294, %s707_s27   ;;  %s707_s27 = sphi %s758_s27, %s899_s27   ;;  %s703_s26 = sphi %s756_s26, %s898_s26   ;;  %s699_s25 = sphi %s754_s25, %s897_s25   ;;  %s695_s24 = sphi %s752_s24, %s896_s24  }
   0x4   : > { %s777_s30 = sadd.s32 1, %s707_s27   ;;  %s179_s8 = sadd.s32 1, %s703_s26 }
   0x5   : > { %s176_s9 = ssub.s32 %s707_s27, %s777_s30  ;;  %p189_p0 = scmp.ne.s32.totalorder %s703_s26, %s699_s25 }
   0x6   : > { %p177_p1 = scmp.eq.s32.totalorder %s176_s9, 0  ;;  %p190_p2 = scmp.eq.s32.totalorder %s773_s28, 1 }
   0x7   : > { %p195_p3 = scmp.ne.s32.totalorder %s699_s25, %s695_s24  ;;  %p196_p4 = scmp.eq.s32.totalorder %s541_s29, 1 }
   0x8   : > { %s788_s10 = scalar_select %p177_p1, %s703_s26, %s179_s8  }
   0x9   : > { %p790_p5 = por %p190_p2, %p189_p0  ;;  %p794_p6 = por %p196_p4, %p195_p3 }
   0xa   : > { %p544_p7 = scmp.ge.s32.totalorder %s707_s27, 1  ;;  %p239_p8 = scmp.lt.s32.totalorder %s707_s27, 3 }
   0xc   : > { %p240_p9 = pnand %p544_p7, %p239_p8 }
   0xd   : > { %p270_p10 = scmp.lt.s32.totalorder (!%p240_p9), %s773_s28, 1  ;;  %vm276_vm0 = vcmask (!%p240_p9), 261120   ;;  %v633_v4 = vld [vmem:[%s889_s3] sm:$0xff] (!%p240_p9)   ;;  %v709_v5 = vmov (!%p240_p9), 0.0   ;;  %vm710_vm1 = vmmov (!%p240_p9), 0   ;;  %v634_v6 = vld [vmem:[%s889_s3 + $0x8] sm:$0xff] (!%p240_p9)  }
   0xe   : > { %243 = sbr.rel (%p240_p9) target bundleno = 672 (0x2a0), region = 48  ;;  %572 = vmatprep.subr.bf16.mxu0 (!%p240_p9), %v709_v5  ;;  %576 = vmatprep.mubr.msk.bf16.mxu0 (!%p240_p9), %vm710_vm1, %v709_v5  ;;  %v547_v17 = vld [vmem:[%s887_s1] ss:$0 sm:$0xff] (!%p240_p9)  ;;  %v636_v24 = vld [vmem:[%s891_s5 + $0x8] sm:$0xff] (!%p240_p9)   ;;  %v637_v25 = vld [vmem:[%s891_s5 + $0x10] sm:$0xff] (!%p240_p9)   ;;  %vm423_vm2 = vcmask (!%p240_p9), 523264  }
   0xf   : > { %573 = vmatpush3.bf16.msra.mxu0 (!%p240_p9), %v633_v4  ;;  %580 = vmatprep.subr.bf16.mxu1 (!%p240_p9), %v709_v5  ;;  %v548_v19 = vld [vmem:[%s888_s2] ss:$0 sm:$0xff] (!%p240_p9)  ;;  %v638_v26 = vld [vmem:[%s891_s5 + $0x18] sm:$0xff] (!%p240_p9)   ;;  %s267_s22 = sand.u32 (!%p240_p9), 1, %s699_s25   ;;  %s561_s9 = sshll.u32 (!%p240_p9), %s773_s28, 7 }
  0x10   : > { %574 = vmatprep.subr.bf16.mxu0 (!%p240_p9), %v709_v5  ;;  %588 = vmatprep.mubr.msk.bf16.mxu1 (!%p240_p9), %vm710_vm1, %v709_v5  ;;  %v635_v23 = vld [vmem:[%s891_s5] sm:$0xff] (!%p240_p9)   ;;  %s545_s23 = sshll.u32 (!%p240_p9), %s267_s22, 3  ;;  %s711_s19 = smov (!%p240_p9), [#allocation2]  }
  0x11   : > { %581 = vmatpush3.bf16.msra.mxu1 (!%p240_p9), %v635_v23  ;;  %v549_v27 = vld [vmem:[%s890_s4] ss:$0 sm:$0xff] (!%p240_p9)  ;;  %s649_s20 = sshll.u32 (!%p240_p9), %s711_s19, 4  ;;  %s650_s20 = int_to_ptr.vmem [resolvable:$false] %s649_s20 }
  0x12   : > { %582 = vmatprep.subr.bf16.mxu1 (!%p240_p9), %v709_v5  ;;  %v554_v39 = vld [vmem:[%s892_s6] ss:$0 sm:$0xff] (!%p240_p9)  ;;  %s651_s21 = scalar_lea.vmem (!%p240_p9), %s650_s20, 256 }
  0x13   : > { %575 = vmatpush3.bf16.msra.mxu0 (!%p240_p9), %v634_v6 }
  0x15   : > { %s271_s13 = scalar_select %p270_p10, %s773_s28, 1  ;;  %583 = vmatpush3.bf16.msra.mxu1 %v636_v24 }
  0x16   : > { %584 = vmatprep.subr.bf16.mxu1 %v709_v5  ;;  %s469_s28 = scalar_lea.sflag [#allocation3], %s267_s22 }
  0x17   : > { %s546_s14 = sshll.u32 %s271_s13, 3  ;;  %s269_s13 = scalar_lea.vmem [#allocation2], %s545_s23 }
  0x18   : > { %s273_s17 = scalar_lea.vmem %s886_s0, %s546_s14  ;;  %s482_s14 = sshll.u32 %s269_s13, 4  ;;  %s845_s14 = int_to_ptr.vmem [resolvable:$true] %s482_s14 }
  0x19   : > { %v275_v0 = vld [vmem:[%s273_s17] sm:$0xff]  ;;  %585 = vmatpush3.bf16.msra.mxu1 %v637_v25  ;;  %s843_s17 = scalar_lea.hbm %s893_s7, %s561_s9  ;;  %s645_s18 = scalar_lea.vmem %s845_s14, 128 }
  0x1a   : > { %v277_v1 = vsel %vm276_vm0, %v275_v0, 0.0  ;;  %v281_v2 = vmul.f32 %v275_v0, %v275_v0  ;;  %586 = vmatprep.subr.bf16.mxu1 %v709_v5  ;;  %p646_p11 = scmp.ne.s32.totalorder %s845_s14, %s645_s18  ;;  %p652_p0 = scmp.lt.s32.totalorder %s845_s14, %s650_s20 }
  0x1b   : > { %278 = vadd.xlane.f32.xlu0 %v277_v1  ;;  %p653_p1 = scmp.lt.s32.totalorder %s651_s21, %s645_s18 }
  0x1c   : > { %v282_v3 = vsel %vm276_vm0, %v281_v2, 0.0  ;;  %p647_p12 = pnand %p646_p11, %p790_p5 }
  0x1d   : > { %587 = vmatpush3.bf16.msra.mxu1 %v638_v26  ;;  %p654_p2 = por %p653_p1, %p652_p0 }
  0x1e   : > { %p648_p13 = pneg %p647_p12 }
  0x1f   : > { %283 = vadd.xlane.f32.xlu0 %v282_v3 }
  0x20   : > { %p655_p3 = pnand %p654_p2, %p648_p13 }
  0xa8   : > { %v279_v7 = vpop.xlane.xlu0 %278 }
  0xa9   : > { %v280_v8 = vmul.f32 0.03125, %v279_v7 }
  0xab   : > { %v286_v10 = vmul.f32 %v280_v8, %v280_v8  ;;  %v289_v15 = vsub.f32 %v275_v0, %v280_v8 }
  0xac   : > { %v284_v9 = vpop.xlane.xlu0 %283 }
  0xad   : > { %v285_v11 = vmul.f32 0.03125, %v284_v9 }
  0xaf   : > { %v287_v12 = vsub.f32 %v285_v11, %v286_v10 }
  0xb1   : > { %v288_v13 = vmax.f32 %v287_v12, 0.0 }
  0xb3   : > { %v290_v14 = vadd.f32 1e-05, %v288_v13 }
  0xb5   : > { %639 = vrsqrt.f32 %v290_v14 }
  0xbf   : > { %v640_v16 = vpop.eup %639 }
  0xc0   : > { %v292_v18 = vmul.f32 %v640_v16, %v289_v15 }
  0xc2   : > { %v300_v20 = vmul.f32 %v547_v17, %v292_v18 }
  0xc4   : > { %v308_v21 = vadd.f32 %v548_v19, %v300_v20 }
  0xc6   : > { %v309_v22 = vpack.c.bf16 %v308_v21, %v308_v21 }
  0xc8   : > { %577 = vmatmul.mubr.msk.bf16.vlgmr.msra.gmra.mrb[0].mxu0 %vm276_vm0, %v309_v22 }
 0x19b   : > { %v370_v28 = vpop.f32.mrb[0].mxu0 }
 0x19c   : > { %v371_v29 = vadd.f32 %v549_v27, %v370_v28  ;;  %v578_v30 = vpop.f32.mrb[1].mxu0 }
 0x19d   : > { %v373_v31 = vpop.f32.mrb[2].mxu0 }
 0x19e   : > { %v553_v32 = vmul.f32 -1.442695, %v371_v29  ;;  %v579_v33 = vpop.f32.mrb[3].mxu0 }
 0x1a0   : > { %641 = vpow2.f32 %v553_v32 }
 0x1aa   : > { %v642_v34 = vpop.eup %641 }
 0x1ab   : > { %v379_v35 = vadd.f32 1.0, %v642_v34 }
 0x1ad   : > { %643 = vrcp.f32 %v379_v35 }
 0x1b7   : > { %v644_v36 = vpop.eup %643 }
 0x1b8   : > { %v382_v37 = vmul.f32 %v644_v36, %v371_v29 }
 0x1ba   : > { %v383_v38 = vpack.c.bf16 %v382_v37, %v382_v37 }
 0x1bc   : > { %589 = vmatmul.mubr.msk.bf16.vlgmr.msra.gmra.mrb[0].mxu1 %vm423_vm2, %v383_v38 }
 0x28f   : > { %v461_v40 = vpop.f32.mrb[0].mxu1 }
 0x290   : > { %v462_v41 = vadd.f32 %v554_v39, %v461_v40  ;;  %v590_v42 = vpop.f32.mrb[1].mxu1 }
 0x291   : > { %v464_v43 = vpop.f32.mrb[2].mxu1 }
 0x292   : > { %v591_v44 = vpop.f32.mrb[3].mxu1  ;;  %467 = vst.msk [vmem:[%s269_s13] sm:$0xff] %vm276_vm0, %v462_v41 }
 0x293   : > { %658 = shalt.err (!%p655_p3)
}
 0x294   : > { %s659_s22 = scalar_lea.hbm %s843_s17, 128  ;;  %s663_s8 = scalar_lea.hbm %s893_s7, 256 }
 0x295   : > { %p660_p4 = scmp.ne.s32.totalorder %s843_s17, %s659_s22  ;;  %p664_p9 = scmp.lt.u32.totalorder %s843_s17, %s893_s7 }
 0x296   : > { %p665_p10 = scmp.lt.u32.totalorder %s663_s8, %s659_s22  ;;  %p667_p12 = scmp.lt.u32.totalorder %s659_s22, %s843_s17 }
 0x297   : > { %p661_p7 = pnand %p660_p4, %p790_p5 }
 0x298   : > { %p666_p11 = por %p665_p10, %p664_p9 }
 0x299   : > { %p662_p8 = pneg %p661_p7 }
 0x29a   : > { %p668_p13 = por %p667_p12, %p666_p11 }
 0x29c   : > { %p669_p0 = pnand %p668_p13, %p662_p8 }
 0x29e   : > { %672 = shalt.err (!%p669_p0)
}
 0x29f   : > { %592 = dma.vmem_to_hbm [thread:$0]  (%p790_p5), %s845_s14, 128, %s843_s17, %s469_s28  }
 0x2a0 PF: > { %p598_p1 = scmp.ge.s32.totalorder %s707_s27, 2  ;;  %s494_s15 = sand.u32 1, %s695_s24  }
 0x2a1   : > { %s495_s16 = scalar_lea.sflag [#allocation3], %s494_s15 }
 0x2a2   : > { %p595_p2 = pnand %p598_p1, %p794_p6 }
 0x2a4   : > { %690 = dma.done.wait (!%p595_p2), %s495_s16, 128  }
 0x2a5   : > { %692 = vsyncadd (!%p595_p2), %s495_s16, 4294967168  ;;  %p17_p3 = scmp.ge.s32.totalorder %s777_s30, 4   ;;  %s896_s24 = smov %s699_s25 }
 0x2a6   : > { %s897_s25 = smov %s703_s26  ;;  %s898_s26 = smov %s788_s10 }
 0x2a7   : > { %s899_s27 = smov %s777_s30  ;;  %19 = sbr.rel (!%p17_p3) target bundleno = 3 (0x3), region = 83 }
 0x2ae   :  { %500 = vsyncpa [#allocation3], 1 }
 0x2af   :  { %502 = vsyncpa [#allocation3 + $0x1], 1 }

</bundles_post_ra>
